<compile_context>
chip_gen: v7x
topology: tpu7x:2x2x1
jax: 0.10.0
libtpu: 0.0.40
codegen_flags: <defaults>
</compile_context>

<pallas_src>
import functools

import numpy as np
import jax
import jax.numpy as jnp
from jax import lax
from jax.experimental import pallas as pl
from jax.experimental.pallas import tpu as pltpu


def _skip_mha_kernel(x_ref, wq_ref, wk_ref, wv_ref, wo_ref, out_ref, *,
                     n_heads, key_dim, val_dim, compute_dtype):
    b_tile, seq, d = x_ref.shape
    m = b_tile * seq

    x3 = x_ref[...]                              # (B_TILE, S, D)  f32
    x2 = x3.reshape(m, d)                        # (M, D), leading-dim merge (safe reshape)
    xc = x2.astype(compute_dtype)                # bf16 operands for the MXU

    # One wide projection matmul per Q / K / V (all heads at once), f32 accumulation.
    # norm_factor is pre-folded into wq_ref in the wrapper.
    qf = jnp.dot(xc, wq_ref[...], preferred_element_type=jnp.float32)   # (M, H*Dk)
    kf = jnp.dot(xc, wk_ref[...], preferred_element_type=jnp.float32)   # (M, H*Dk)
    vf = jnp.dot(xc, wv_ref[...], preferred_element_type=jnp.float32)   # (M, H*Dv)

    # Per-batch view for the attention stage (leading-dim split only; minor dim fixed).
    q = qf.reshape(b_tile, seq, n_heads * key_dim)
    k = kf.reshape(b_tile, seq, n_heads * key_dim)
    v = vf.reshape(b_tile, seq, n_heads * val_dim)

    # Residual accumulator in f32: acc = input0 + sum_h (head_h @ W_out[h]).
    acc = x2
    for h in range(n_heads):                     # static unroll; n_heads is small
        qh = q[:, :, h * key_dim:(h + 1) * key_dim]   # (B_TILE, S, Dk) static lane slice
        kh = k[:, :, h * key_dim:(h + 1) * key_dim]
        vh = v[:, :, h * val_dim:(h + 1) * val_dim]

        # scores: contract feature dims, batch over the batch-tile — no K transpose.
        sc = lax.dot_general(qh, kh, (((2,), (2,)), ((0,), (0,))),
                             preferred_element_type=jnp.float32)        # (B_TILE, S, S)

        # softmax over the key axis — all elementwise math in f32 (v5e-safe).
        sc_max = jnp.max(sc, axis=-1, keepdims=True)
        e = jnp.exp(sc - sc_max)
        denom = jnp.sum(e, axis=-1, keepdims=True)
        attn = e * pl.reciprocal(denom, approx=False)    # exact recip on a tiny tensor

        # attn @ V, batched over the batch-tile.
        # Note: attn cast to bf16 for the MXU is the dominant (but in-tolerance) error term.
        ho = lax.dot_general(attn.astype(compute_dtype), vh.astype(compute_dtype),
                             (((2,), (1,)), ((0,), (0,))),
                             preferred_element_type=jnp.float32)        # (B_TILE, S, Dv)

        # Per-head output projection, accumulated directly (no concat / heads buffer).
        ho2 = ho.reshape(m, val_dim).astype(compute_dtype)              # (M, Dv)
        woh = wo_ref[h * val_dim:(h + 1) * val_dim, :]                  # (Dv, E) static slice
        acc = acc + jnp.dot(ho2, woh, preferred_element_type=jnp.float32)

    out_ref[...] = acc.reshape(b_tile, seq, d).astype(out_ref.dtype)


def _pick_batch_tile(batch, seq, input_dim, n_heads, key_dim, val_dim):
    """Largest divisor of `batch` that (a) targets ~2048 MXU rows, (b) fits a
    lane-padded f32 VMEM budget, (c) leaves >=2 (>=4 when possible) grid steps."""
    lane = 128
    f32b = 4

    def pad(x):
        return ((x + lane - 1) // lane) * lane

    pad_d = pad(input_dim)
    pad_s = pad(seq)
    pad_hk = pad(n_heads * key_dim)
    pad_hv = pad(n_heads * val_dim)

    # Conservative lane-padded f32 bytes per batch element per grid step:
    #   in/out blocks (double-buffered) + Q/K/V activations + residual accumulator
    #   + per-head sc/e/attn/ho temporaries (unroll keeps them live).
    per_b = f32b * seq * (
        4 * pad_d
        + 2 * pad_hk + pad_hv
        + pad_d
        + n_heads * (3 * pad_s + pad_hv)
    )
    vmem_budget = 20 * 1024 * 1024          # headroom under the 32 MiB scoped limit
    cap_vmem = max(1, vmem_budget // max(per_b, 1))

    target_bt = max(1, 2048 // max(seq, 1))  # M = B_TILE*seq ~ 2048 rows

    if batch >= 8:
        grid_cap = batch // 4                # >=4 grid steps: keeps both v7x TCs busy
    elif batch >= 2:
        grid_cap = batch // 2                # >=2 grid steps
    else:
        grid_cap = 1

    limit = max(1, min(target_bt, cap_vmem, grid_cap))
    batch_tile = 1
    for t in range(1, batch + 1):
        if batch % t == 0 and t <= limit:
            batch_tile = t
    return batch_tile


def skip_connection_mha(input0, input1, W_query, W_key, W_val, W_out, *,
                        compute_dtype=jnp.bfloat16, batch_tile=None):
    """Forward of SkipConnectionSimple(MultiHeadAttention): (input0 + MHA(input0), input1)."""
    batch, seq, input_dim = input0.shape
    n_heads, _, key_dim = W_query.shape
    val_dim = W_val.shape[-1]
    embed_dim = W_out.shape[-1]
    assert embed_dim == input_dim, "residual skip connection requires embed_dim == input_dim"
    norm_factor = float(1.0 / np.sqrt(key_dim))

    # Concatenate per-head weights along the output dim (wrapper-side, one-time, XLA).
    # norm_factor is folded into Wq (constant fold on a tiny grid-resident weight).
    wq_cat = (jnp.transpose(W_query, (1, 0, 2)).reshape(input_dim, n_heads * key_dim)
              * norm_factor)
    wk_cat = jnp.transpose(W_key, (1, 0, 2)).reshape(input_dim, n_heads * key_dim)
    wv_cat = jnp.transpose(W_val, (1, 0, 2)).reshape(input_dim, n_heads * val_dim)
    wo_flat = W_out.reshape(n_heads * val_dim, embed_dim)

    # Pre-cast weights: halves their (already tiny, grid-resident) DMA footprint.
    wq_cat = wq_cat.astype(compute_dtype)
    wk_cat = wk_cat.astype(compute_dtype)
    wv_cat = wv_cat.astype(compute_dtype)
    wo_flat = wo_flat.astype(compute_dtype)

    # Batch tile: explicit tunable; otherwise heuristic (see _pick_batch_tile).
    if batch_tile is None:
        batch_tile = _pick_batch_tile(batch, seq, input_dim, n_heads, key_dim, val_dim)
    assert batch % batch_tile == 0
    grid = (batch // batch_tile,)

    kernel = functools.partial(
        _skip_mha_kernel,
        n_heads=n_heads, key_dim=key_dim, val_dim=val_dim,
        compute_dtype=compute_dtype)

    # Advisory cost estimate so XLA schedules/overlaps the custom call sensibly.
    flops = 2 * batch * seq * input_dim * n_heads * (2 * key_dim + val_dim)     # Q,K,V proj
    flops += 2 * batch * n_heads * seq * seq * (key_dim + val_dim)              # scores + attn@V
    flops += 2 * batch * seq * n_heads * val_dim * embed_dim                    # out proj
    flops += batch * seq * embed_dim                                            # residual add
    transcendentals = batch * n_heads * seq * seq
    weight_bytes = 2 * (wq_cat.size + wk_cat.size + wv_cat.size + wo_flat.size)
    bytes_accessed = 4 * 2 * batch * seq * input_dim + weight_bytes

    out0 = pl.pallas_call(
        kernel,
        out_shape=jax.ShapeDtypeStruct((batch, seq, embed_dim), input0.dtype),
        grid_spec=pltpu.PrefetchScalarGridSpec(
            num_scalar_prefetch=0,
            grid=grid,
            in_specs=[
                pl.BlockSpec((batch_tile, seq, input_dim), lambda b: (b, 0, 0)),
                # Weights: full-extent blocks with constant index -> fetched once,
                # stay VMEM-resident for the whole grid.
                pl.BlockSpec((input_dim, n_heads * key_dim), lambda b: (0, 0)),
                pl.BlockSpec((input_dim, n_heads * key_dim), lambda b: (0, 0)),
                pl.BlockSpec((input_dim, n_heads * val_dim), lambda b: (0, 0)),
                pl.BlockSpec((n_heads * val_dim, embed_dim), lambda b: (0, 0)),
            ],
            out_specs=pl.BlockSpec((batch_tile, seq, embed_dim), lambda b: (b, 0, 0)),
        ),
        compiler_params=pltpu.CompilerParams(
            dimension_semantics=("parallel",),     # v7x's 2 TensorCores split the batch axis
            vmem_limit_bytes=32 * 1024 * 1024,     # raise v5e default; safe on v7x (64 MiB phys)
        ),
        cost_estimate=pl.CostEstimate(
            flops=int(flops),
            transcendentals=int(transcendentals),
            bytes_accessed=int(bytes_accessed)),
    )(input0, wq_cat, wk_cat, wv_cat, wo_flat)

    # SkipConnectionSimple passes input1 through untouched.
    return out0, input1


def _reference_forward(input0, input1, W_query, W_key, W_val, W_out):
    """Pure-JAX mirror of SkipConnectionSimple(MultiHeadAttention) forward (f32)."""
    n_heads, input_dim, key_dim = W_query.shape
    batch, seq, _ = input0.shape
    norm_factor = 1.0 / np.sqrt(key_dim)

    flat = input0.reshape(-1, input_dim)
    Q = jnp.einsum("ni,hik->hnk", flat, W_query).reshape(n_heads, batch, seq, -1)
    K = jnp.einsum("ni,hik->hnk", flat, W_key).reshape(n_heads, batch, seq, -1)
    V = jnp.einsum("ni,hik->hnk", flat, W_val).reshape(n_heads, batch, seq, -1)

    compat = norm_factor * jnp.einsum("hbqk,hbgk->hbqg", Q, K)
    attn = jax.nn.softmax(compat, axis=-1)
    heads = jnp.einsum("hbqg,hbgv->hbqv", attn, V)
    mha = jnp.einsum("hbqv,hve->bqe", heads, W_out)
    return input0 + mha, input1


if __name__ == "__main__":
    # Small shapes consistent with the module (embed_dim == input_dim for the residual).
    n_heads = 2
    embed_dim = 32
    input_dim = embed_dim
    val_dim = embed_dim // n_heads      # 16
    key_dim = val_dim                   # 16
    seq = 8

    key = jax.random.PRNGKey(0)
    ks = jax.random.split(key, 6)

    def init_w(k, shape):
        stdv = 1.0 / np.sqrt(shape[-1])
        return jax.random.uniform(k, shape, jnp.float32, minval=-stdv, maxval=stdv)

    W_query = init_w(ks[0], (n_heads, input_dim, key_dim))
    W_key = init_w(ks[1], (n_heads, input_dim, key_dim))
    W_val = init_w(ks[2], (n_heads, input_dim, val_dim))
    W_out = init_w(ks[3], (n_heads, val_dim, embed_dim))

    # Case 1: tiny (batch=2) — exercises grid=(2,), batch_tile=1.
    batch = 2
    input0 = jax.random.normal(ks[4], (batch, seq, input_dim), jnp.float32)
    input1 = jax.random.normal(ks[5], (batch, seq, input_dim), jnp.float32)

    out0, out1 = skip_connection_mha(input0, input1, W_query, W_key, W_val, W_out)
    out0 = jax.block_until_ready(out0)

    ref0, ref1 = _reference_forward(input0, input1, W_query, W_key, W_val, W_out)
    np.testing.assert_allclose(np.asarray(out0), np.asarray(ref0), rtol=2e-2, atol=2e-2)
    np.testing.assert_array_equal(np.asarray(out1), np.asarray(ref1))

    # Case 2: batch=16 — exercises batch_tile > 1 and the multi-step parallel grid.
    batch = 16
    kb = jax.random.split(jax.random.PRNGKey(1), 2)
    input0b = jax.random.normal(kb[0], (batch, seq, input_dim), jnp.float32)
    input1b = jax.random.normal(kb[1], (batch, seq, input_dim), jnp.float32)

    out0b, out1b = skip_connection_mha(input0b, input1b, W_query, W_key, W_val, W_out)
    out0b = jax.block_until_ready(out0b)

    ref0b, ref1b = _reference_forward(input0b, input1b, W_query, W_key, W_val, W_out)
    np.testing.assert_allclose(np.asarray(out0b), np.asarray(ref0b), rtol=2e-2, atol=2e-2)
    np.testing.assert_array_equal(np.asarray(out1b), np.asarray(ref1b))

    print("KERNEL_OK")
</pallas_src>

<mosaic_0001>
module attributes {stable_mosaic.version = 11 : i64} {
  func.func @_skip_mha_kernel(%arg0: i32, %arg1: memref<1x8x32xf32, #tpu.memory_space<vmem>>, %arg2: memref<32x32xbf16, #tpu.memory_space<vmem>>, %arg3: memref<32x32xbf16, #tpu.memory_space<vmem>>, %arg4: memref<32x32xbf16, #tpu.memory_space<vmem>>, %arg5: memref<32x32xbf16, #tpu.memory_space<vmem>>, %arg6: memref<1x8x32xf32, #tpu.memory_space<vmem>>) attributes {dimension_semantics = [#tpu.dimension_semantics<parallel>], iteration_bounds = array<i64: 2>, scalar_prefetch = 0 : i64, scratch_operands = 0 : i64, tpu.core_type = #tpu.core_type<tc>, window_params = [{transform_indices = @transform_0, window_bounds = array<i64: 1, 8, 32>}, {pipeline_mode = #tpu.pipeline_mode<synchronous>, transform_indices = @transform_1, window_bounds = array<i64: 32, 32>}, {pipeline_mode = #tpu.pipeline_mode<synchronous>, transform_indices = @transform_2, window_bounds = array<i64: 32, 32>}, {pipeline_mode = #tpu.pipeline_mode<synchronous>, transform_indices = @transform_3, window_bounds = array<i64: 32, 32>}, {pipeline_mode = #tpu.pipeline_mode<synchronous>, transform_indices = @transform_4, window_bounds = array<i64: 32, 32>}, {transform_indices = @transform_5, window_bounds = array<i64: 1, 8, 32>}]} {
    %c0 = arith.constant 0 : index
    %c0_0 = arith.constant 0 : index
    %c0_1 = arith.constant 0 : index
    %0 = vector.load %arg1[%c0, %c0_0, %c0_1] : memref<1x8x32xf32, #tpu.memory_space<vmem>>, vector<1x8x32xf32>
    %1 = vector.shape_cast %0 : vector<1x8x32xf32> to vector<8x32xf32>
    %2 = arith.truncf %1 : vector<8x32xf32> to vector<8x32xbf16>
    %c0_2 = arith.constant 0 : index
    %c0_3 = arith.constant 0 : index
    %3 = vector.load %arg2[%c0_2, %c0_3] : memref<32x32xbf16, #tpu.memory_space<vmem>>, vector<32x32xbf16>
    %cst = arith.constant dense<0.000000e+00> : vector<8x32xf32>
    %4 = tpu.matmul %2, %3, %cst {dimension_numbers = #tpu.dot_dimension_numbers<[1], [0], [0], [1], [0, 0, 1, 1], [], []>} : vector<8x32xbf16>, vector<32x32xbf16>, vector<8x32xf32> -> vector<8x32xf32>
    %c0_4 = arith.constant 0 : index
    %c0_5 = arith.constant 0 : index
    %5 = vector.load %arg3[%c0_4, %c0_5] : memref<32x32xbf16, #tpu.memory_space<vmem>>, vector<32x32xbf16>
    %cst_6 = arith.constant dense<0.000000e+00> : vector<8x32xf32>
    %6 = tpu.matmul %2, %5, %cst_6 {dimension_numbers = #tpu.dot_dimension_numbers<[1], [0], [0], [1], [0, 0, 1, 1], [], []>} : vector<8x32xbf16>, vector<32x32xbf16>, vector<8x32xf32> -> vector<8x32xf32>
    %c0_7 = arith.constant 0 : index
    %c0_8 = arith.constant 0 : index
    %7 = vector.load %arg4[%c0_7, %c0_8] : memref<32x32xbf16, #tpu.memory_space<vmem>>, vector<32x32xbf16>
    %cst_9 = arith.constant dense<0.000000e+00> : vector<8x32xf32>
    %8 = tpu.matmul %2, %7, %cst_9 {dimension_numbers = #tpu.dot_dimension_numbers<[1], [0], [0], [1], [0, 0, 1, 1], [], []>} : vector<8x32xbf16>, vector<32x32xbf16>, vector<8x32xf32> -> vector<8x32xf32>
    %9 = vector.shape_cast %4 : vector<8x32xf32> to vector<1x8x32xf32>
    %10 = vector.shape_cast %6 : vector<8x32xf32> to vector<1x8x32xf32>
    %11 = vector.shape_cast %8 : vector<8x32xf32> to vector<1x8x32xf32>
    %12 = vector.extract_strided_slice %9 {offsets = [0, 0, 0], sizes = [1, 8, 16], strides = [1, 1, 1]} : vector<1x8x32xf32> to vector<1x8x16xf32>
    %13 = vector.extract_strided_slice %10 {offsets = [0, 0, 0], sizes = [1, 8, 16], strides = [1, 1, 1]} : vector<1x8x32xf32> to vector<1x8x16xf32>
    %14 = vector.extract_strided_slice %11 {offsets = [0, 0, 0], sizes = [1, 8, 16], strides = [1, 1, 1]} : vector<1x8x32xf32> to vector<1x8x16xf32>
    %cst_10 = arith.constant dense<0.000000e+00> : vector<1x8x8xf32>
    %15 = tpu.matmul %12, %13, %cst_10 {dimension_numbers = #tpu.dot_dimension_numbers<[2], [2], [1], [1], [0, 0, 0, 1, 1, 1], [0], [0]>} : vector<1x8x16xf32>, vector<1x8x16xf32>, vector<1x8x8xf32> -> vector<1x8x8xf32>
    %cst_11 = arith.constant dense<0xFF800000> : vector<1x8xf32>
    %16 = vector.multi_reduction <maximumf>, %15, %cst_11 [2] : vector<1x8x8xf32> to vector<1x8xf32>
    %17 = vector.shape_cast %16 : vector<1x8xf32> to vector<1x8x1xf32>
    %18 = vector.broadcast %17 : vector<1x8x1xf32> to vector<1x8x8xf32>
    %19 = arith.subf %15, %18 : vector<1x8x8xf32>
    %20 = math.exp %19 : vector<1x8x8xf32>
    %cst_12 = arith.constant dense<0.000000e+00> : vector<1x8xf32>
    %21 = vector.multi_reduction <add>, %20, %cst_12 [2] : vector<1x8x8xf32> to vector<1x8xf32>
    %22 = vector.shape_cast %21 : vector<1x8xf32> to vector<1x8x1xf32>
    %23 = tpu.reciprocal %22 : vector<1x8x1xf32> -> vector<1x8x1xf32>
    %24 = vector.broadcast %23 : vector<1x8x1xf32> to vector<1x8x8xf32>
    %25 = arith.mulf %20, %24 : vector<1x8x8xf32>
    %26 = arith.truncf %25 : vector<1x8x8xf32> to vector<1x8x8xbf16>
    %27 = arith.truncf %14 : vector<1x8x16xf32> to vector<1x8x16xbf16>
    %cst_13 = arith.constant dense<0.000000e+00> : vector<1x8x16xf32>
    %28 = tpu.matmul %26, %27, %cst_13 {dimension_numbers = #tpu.dot_dimension_numbers<[2], [1], [1], [2], [0, 0, 0, 1, 1, 2], [0], [0]>} : vector<1x8x8xbf16>, vector<1x8x16xbf16>, vector<1x8x16xf32> -> vector<1x8x16xf32>
    %29 = vector.shape_cast %28 : vector<1x8x16xf32> to vector<8x16xf32>
    %30 = arith.truncf %29 : vector<8x16xf32> to vector<8x16xbf16>
    %c0_14 = arith.constant 0 : index
    %c0_15 = arith.constant 0 : index
    %31 = vector.load %arg5[%c0_14, %c0_15] : memref<32x32xbf16, #tpu.memory_space<vmem>>, vector<16x32xbf16>
    %cst_16 = arith.constant dense<0.000000e+00> : vector<8x32xf32>
    %32 = tpu.matmul %30, %31, %cst_16 {dimension_numbers = #tpu.dot_dimension_numbers<[1], [0], [0], [1], [0, 0, 1, 1], [], []>} : vector<8x16xbf16>, vector<16x32xbf16>, vector<8x32xf32> -> vector<8x32xf32>
    %33 = arith.addf %1, %32 : vector<8x32xf32>
    %34 = vector.extract_strided_slice %9 {offsets = [0, 0, 16], sizes = [1, 8, 16], strides = [1, 1, 1]} : vector<1x8x32xf32> to vector<1x8x16xf32>
    %35 = vector.extract_strided_slice %10 {offsets = [0, 0, 16], sizes = [1, 8, 16], strides = [1, 1, 1]} : vector<1x8x32xf32> to vector<1x8x16xf32>
    %36 = vector.extract_strided_slice %11 {offsets = [0, 0, 16], sizes = [1, 8, 16], strides = [1, 1, 1]} : vector<1x8x32xf32> to vector<1x8x16xf32>
    %cst_17 = arith.constant dense<0.000000e+00> : vector<1x8x8xf32>
    %37 = tpu.matmul %34, %35, %cst_17 {dimension_numbers = #tpu.dot_dimension_numbers<[2], [2], [1], [1], [0, 0, 0, 1, 1, 1], [0], [0]>} : vector<1x8x16xf32>, vector<1x8x16xf32>, vector<1x8x8xf32> -> vector<1x8x8xf32>
    %cst_18 = arith.constant dense<0xFF800000> : vector<1x8xf32>
    %38 = vector.multi_reduction <maximumf>, %37, %cst_18 [2] : vector<1x8x8xf32> to vector<1x8xf32>
    %39 = vector.shape_cast %38 : vector<1x8xf32> to vector<1x8x1xf32>
    %40 = vector.broadcast %39 : vector<1x8x1xf32> to vector<1x8x8xf32>
    %41 = arith.subf %37, %40 : vector<1x8x8xf32>
    %42 = math.exp %41 : vector<1x8x8xf32>
    %cst_19 = arith.constant dense<0.000000e+00> : vector<1x8xf32>
    %43 = vector.multi_reduction <add>, %42, %cst_19 [2] : vector<1x8x8xf32> to vector<1x8xf32>
    %44 = vector.shape_cast %43 : vector<1x8xf32> to vector<1x8x1xf32>
    %45 = tpu.reciprocal %44 : vector<1x8x1xf32> -> vector<1x8x1xf32>
    %46 = vector.broadcast %45 : vector<1x8x1xf32> to vector<1x8x8xf32>
    %47 = arith.mulf %42, %46 : vector<1x8x8xf32>
    %48 = arith.truncf %47 : vector<1x8x8xf32> to vector<1x8x8xbf16>
    %49 = arith.truncf %36 : vector<1x8x16xf32> to vector<1x8x16xbf16>
    %cst_20 = arith.constant dense<0.000000e+00> : vector<1x8x16xf32>
    %50 = tpu.matmul %48, %49, %cst_20 {dimension_numbers = #tpu.dot_dimension_numbers<[2], [1], [1], [2], [0, 0, 0, 1, 1, 2], [0], [0]>} : vector<1x8x8xbf16>, vector<1x8x16xbf16>, vector<1x8x16xf32> -> vector<1x8x16xf32>
    %51 = vector.shape_cast %50 : vector<1x8x16xf32> to vector<8x16xf32>
    %52 = arith.truncf %51 : vector<8x16xf32> to vector<8x16xbf16>
    %c16 = arith.constant 16 : index
    %c0_21 = arith.constant 0 : index
    %53 = vector.load %arg5[%c16, %c0_21] : memref<32x32xbf16, #tpu.memory_space<vmem>>, vector<16x32xbf16>
    %cst_22 = arith.constant dense<0.000000e+00> : vector<8x32xf32>
    %54 = tpu.matmul %52, %53, %cst_22 {dimension_numbers = #tpu.dot_dimension_numbers<[1], [0], [0], [1], [0, 0, 1, 1], [], []>} : vector<8x16xbf16>, vector<16x32xbf16>, vector<8x32xf32> -> vector<8x32xf32>
    %55 = arith.addf %33, %54 : vector<8x32xf32>
    %56 = vector.shape_cast %55 : vector<8x32xf32> to vector<1x8x32xf32>
    %c0_23 = arith.constant 0 : index
    %c0_24 = arith.constant 0 : index
    %c0_25 = arith.constant 0 : index
    %57 = vector.load %arg6[%c0_23, %c0_24, %c0_25] : memref<1x8x32xf32, #tpu.memory_space<vmem>>, vector<1x8x32xf32>
    tpu.vector_store %arg6[%c0_23, %c0_24, %c0_25], %56 {strides = array<i32>} : memref<1x8x32xf32, #tpu.memory_space<vmem>>, vector<1x8x32xf32>,
    return
  }
  func.func @transform_0(%arg0: i32) -> (i32, i32, i32) {
    %c0_i32 = arith.constant 0 : i32
    %c0_i32_0 = arith.constant 0 : i32
    %c0_i32_1 = arith.constant 0 : i32
    return %arg0, %c0_i32, %c0_i32_0 : i32, i32, i32
  }
  func.func @transform_1(%arg0: i32) -> (i32, i32) {
    %c0_i32 = arith.constant 0 : i32
    %c0_i32_0 = arith.constant 0 : i32
    %c0_i32_1 = arith.constant 0 : i32
    return %c0_i32, %c0_i32_0 : i32, i32
  }
  func.func @transform_2(%arg0: i32) -> (i32, i32) {
    %c0_i32 = arith.constant 0 : i32
    %c0_i32_0 = arith.constant 0 : i32
    %c0_i32_1 = arith.constant 0 : i32
    return %c0_i32, %c0_i32_0 : i32, i32
  }
  func.func @transform_3(%arg0: i32) -> (i32, i32) {
    %c0_i32 = arith.constant 0 : i32
    %c0_i32_0 = arith.constant 0 : i32
    %c0_i32_1 = arith.constant 0 : i32
    return %c0_i32, %c0_i32_0 : i32, i32
  }
  func.func @transform_4(%arg0: i32) -> (i32, i32) {
    %c0_i32 = arith.constant 0 : i32
    %c0_i32_0 = arith.constant 0 : i32
    %c0_i32_1 = arith.constant 0 : i32
    return %c0_i32, %c0_i32_0 : i32, i32
  }
  func.func @transform_5(%arg0: i32) -> (i32, i32, i32) {
    %c0_i32 = arith.constant 0 : i32
    %c0_i32_0 = arith.constant 0 : i32
    %c0_i32_1 = arith.constant 0 : i32
    return %arg0, %c0_i32, %c0_i32_0 : i32, i32, i32
  }
}

</mosaic_0001>

<bundles_post_ra>
// kernel: tpu_custom_call.1
= control target key start
LH: loop header
LB: loop body
LE: loop exit
PB: predicated region body
PF: predicated region fallthrough
CT: control target
= control target key end

     0   :  { %10 = vsyncpa [#allocation3], 0  ;;  %s1821_s0 = inlined_call_operand.hbm [shape: f32[2,8,32], index: 0, kind: input, shape index: {}]   ;;  %s1822_s1 = inlined_call_operand.hbm [shape: bf16[32,32], index: 1, kind: input, shape index: {}]   ;;  %s1823_s2 = inlined_call_operand.hbm [shape: bf16[32,32], index: 2, kind: input, shape index: {}]   ;;  %s1824_s3 = inlined_call_operand.hbm [shape: bf16[32,32], index: 3, kind: input, shape index: {}]   ;;  %s1825_s4 = inlined_call_operand.hbm [shape: bf16[32,32], index: 4, kind: input, shape index: {}]   ;;  %s1826_s5 = inlined_call_operand.hbm [shape: f32[2,8,32], index: 5, kind: output, shape index: {}]  }
   0x1   :  { %12 = vsyncpa [#allocation3 + $0x1], 0 }
   0x2   :  { %13 = vsyncpa [#allocation6], 0 }
   0x3   :  { %14 = vsyncpa [#allocation9], 0 }
   0x4   :  { %15 = vsyncpa [#allocation4], 0 }
   0x5   :  { %17 = vsyncpa [#allocation4 + $0x1], 0  ;;  %s1469_s18 = smov 0   ;;  %s1471_s19 = smov 0  }
   0x6   :  { %s1473_s20 = smov 0   ;;  %s1475_s21 = smov 0  }
   0x7 LB: > { %s1428_s22 = smov [#allocation5]   ;;  %s1490_s24 = sadd.s32 4294967295, %s1426_s21   ;;  %s1426_s21 = sphi %s1475_s21, %s1850_s21   ;;  %s1422_s20 = sphi %s1473_s20, %s1849_s20   ;;  %s1418_s19 = sphi %s1471_s19, %s1848_s19   ;;  %s1414_s18 = sphi %s1469_s18, %s1847_s18  }
   0x8   : > { %s176_s23 = sshll.u32 %s1428_s22, 4  ;;  %p980_p0 = scmp.ge.s32.totalorder %s1426_s21, 1  ;;  %s1495_s23 = int_to_ptr.vmem [resolvable:$true] %s176_s23 }
   0x9   : > { %p1827_p1 = scmp.eq.s32.totalorder %s1490_s24, 0  ;;  %p164_p2 = scmp.lt.s32.totalorder %s1426_s21, 3 }
   0xa   : > { %s1429_s26 = smov [#allocation8]   ;;  %s1430_s29 = smov [#allocation7]  }
   0xb   : > { %p1497_p3 = pnand %p980_p0, %p164_p2  ;;  %s202_s27 = sshll.u32 %s1429_s26, 4  ;;  %s1510_s27 = int_to_ptr.vmem [resolvable:$true] %s202_s27 }
   0xc   : > { %s189_s30 = sshll.u32 %s1430_s29, 4  ;;  %s1210_s8 = scalar_lea.hbm %s1822_s1, 256  ;;  %s1512_s30 = int_to_ptr.vmem [resolvable:$true] %s189_s30 }
   0xd   : > { %s1830_s25 = scalar_select %p1497_p3, 1, 0 }
   0xe   : > { %p1122_p5 = pneg %p1497_p3  ;;  %p1211_p7 = scmp.ne.s32.totalorder %s1822_s1, %s1210_s8 }
   0xf   : > { %p1217_p11 = scmp.lt.u32.totalorder %s1210_s8, %s1822_s1 }
  0x10   : > { %p1506_p6 = pnand %p1122_p5, %p1827_p1 }
  0x12   : > { %p1522_p8 = pneg %p1506_p6 }
  0x14   : > { %p1213_p9 = pnand %p1522_p8, %p1211_p7 }
  0x16   : > { %p1214_p10 = pneg %p1213_p9 }
  0x18   : > { %p1219_p12 = pnand %p1217_p11, %p1214_p10 }
  0x1a   : > { %1222 = shalt.err (!%p1219_p12)
}
  0x1b   : > { %s1223_s14 = scalar_lea.vmem %s1495_s23, 256  ;;  %p1231_p5 = scmp.lt.s32.totalorder %s1495_s23, %s1495_s23 }
  0x1c   : > { %p1224_p13 = scmp.ne.s32.totalorder %s1495_s23, %s1223_s14  ;;  %p1232_p4 = scmp.lt.s32.totalorder %s1223_s14, %s1223_s14 }
  0x1e   : > { %p1226_p0 = pnand %p1224_p13, %p1522_p8  ;;  %p1233_p7 = por %p1232_p4, %p1231_p5 }
  0x20   : > { %p1227_p2 = pneg %p1226_p0 }
  0x22   : > { %p1234_p9 = pnand %p1233_p7, %p1227_p2 }
  0x24   : > { %1237 = shalt.err (!%p1234_p9)
}
  0x25   : > { %s1431_s15 = smov 64   ;;  %s1432_s16 = smov 4  }
  0x26   : > { %1125 = dma.hbm_to_vmem [thread:$0]  (!%p1506_p6), %s1822_s1, 256, %s1495_s23, [#allocation6], %s1431_s15, %s1431_s15, %s1432_s16  }
  0x27   : > { %s1238_s6 = scalar_lea.hbm %s1824_s3, 256 }
  0x28   : > { %p1239_p4 = scmp.ne.s32.totalorder %s1824_s3, %s1238_s6  ;;  %p1245_p12 = scmp.lt.u32.totalorder %s1238_s6, %s1824_s3 }
  0x2a   : > { %p1241_p10 = pnand %p1239_p4, %p1522_p8 }
  0x2c   : > { %p1242_p11 = pneg %p1241_p10 }
  0x2e   : > { %p1247_p13 = pnand %p1245_p12, %p1242_p11 }
  0x30   : > { %1250 = shalt.err (!%p1247_p13)
}
  0x31   : > { %s1251_s23 = scalar_lea.vmem %s1510_s27, 256  ;;  %p1259_p7 = scmp.lt.s32.totalorder %s1510_s27, %s1510_s27 }
  0x32   : > { %p1252_p0 = scmp.ne.s32.totalorder %s1510_s27, %s1251_s23  ;;  %p1260_p9 = scmp.lt.s32.totalorder %s1251_s23, %s1251_s23 }
  0x34   : > { %p1254_p2 = pnand %p1252_p0, %p1522_p8  ;;  %p1261_p4 = por %p1260_p9, %p1259_p7 }
  0x36   : > { %p1255_p5 = pneg %p1254_p2 }
  0x38   : > { %p1262_p10 = pnand %p1261_p4, %p1255_p5 }
  0x3a   : > { %1265 = shalt.err (!%p1262_p10)
}
  0x3b   : > { %1131 = dma.hbm_to_vmem [thread:$0]  (!%p1506_p6), %s1824_s3, 256, %s1510_s27, [#allocation9], %s1431_s15, %s1431_s15, %s1432_s16  }
  0x3c   : > { %s1266_s22 = scalar_lea.hbm %s1823_s2, 256 }
  0x3d   : > { %p1267_p11 = scmp.ne.s32.totalorder %s1823_s2, %s1266_s22  ;;  %p1273_p0 = scmp.lt.u32.totalorder %s1266_s22, %s1823_s2 }
  0x3f   : > { %p1269_p12 = pnand %p1267_p11, %p1522_p8 }
  0x41   : > { %p1270_p13 = pneg %p1269_p12 }
  0x43   : > { %p1275_p2 = pnand %p1273_p0, %p1270_p13 }
  0x45   : > { %1278 = shalt.err (!%p1275_p2)
}
  0x46   : > { %s1279_s27 = scalar_lea.vmem %s1512_s30, 256  ;;  %p1287_p4 = scmp.lt.s32.totalorder %s1512_s30, %s1512_s30 }
  0x47   : > { %p1280_p5 = scmp.ne.s32.totalorder %s1512_s30, %s1279_s27  ;;  %p1288_p10 = scmp.lt.s32.totalorder %s1279_s27, %s1279_s27 }
  0x49   : > { %p1282_p7 = pnand %p1280_p5, %p1522_p8  ;;  %p1289_p11 = por %p1288_p10, %p1287_p4 }
  0x4b   : > { %p1283_p9 = pneg %p1282_p7 }
  0x4d   : > { %p1290_p12 = pnand %p1289_p11, %p1283_p9 }
  0x4f   : > { %1293 = shalt.err (!%p1290_p12)
}
  0x50   : > { %1128 = dma.hbm_to_vmem [thread:$0]  (!%p1506_p6), %s1823_s2, 256, %s1512_s30, [#allocation6], %s1431_s15, %s1431_s15, %s1432_s16  }
  0x51   : > { %s1433_s10 = smov [#allocation10]   ;;  %s1294_s14 = scalar_lea.hbm %s1825_s4, 256 }
  0x52   : > { %s215_s23 = sshll.u32 %s1433_s10, 4  ;;  %p1295_p13 = scmp.ne.s32.totalorder %s1825_s4, %s1294_s14  ;;  %s216_s23 = int_to_ptr.vmem [resolvable:$true] %s215_s23 }
  0x53   : > { %p1301_p5 = scmp.lt.u32.totalorder %s1294_s14, %s1825_s4 }
  0x54   : > { %p1297_p0 = pnand %p1295_p13, %p1522_p8 }
  0x56   : > { %p1298_p2 = pneg %p1297_p0 }
  0x58   : > { %p1303_p7 = pnand %p1301_p5, %p1298_p2 }
  0x5a   : > { %1306 = shalt.err (!%p1303_p7)
}
  0x5b   : > { %s1307_s30 = scalar_lea.vmem %s216_s23, 256  ;;  %p1315_p11 = scmp.lt.s32.totalorder %s216_s23, %s216_s23 }
  0x5c   : > { %p1308_p9 = scmp.ne.s32.totalorder %s216_s23, %s1307_s30  ;;  %p1316_p12 = scmp.lt.s32.totalorder %s1307_s30, %s1307_s30 }
  0x5e   : > { %p1310_p4 = pnand %p1308_p9, %p1522_p8  ;;  %p1317_p1 = por %p1316_p12, %p1315_p11 }
  0x60   : > { %p1311_p10 = pneg %p1310_p4 }
  0x62   : > { %p1318_p3 = pnand %p1317_p1, %p1311_p10 }
  0x64   : > { %1321 = shalt.err (!%p1318_p3)
}
  0x65   : > { %1134 = dma.hbm_to_vmem [thread:$0]  (!%p1506_p6), %s1825_s4, 256, %s216_s23, [#allocation9], %s1431_s15, %s1431_s15, %s1432_s16  }
  0x66   : > { %s979_s28 = sadd.s32 4294967294, %s1426_s21   ;;  %s1621_s11 = sadd.s32 1, %s1426_s21  }
  0x67   : > { %s27_s27 = ssub.s32 %s1426_s21, %s1621_s11  ;;  %s30_s8 = sadd.s32 1, %s1422_s20 }
  0x68   : > { %p28_p1 = scmp.eq.s32.totalorder %s27_s27, 0  ;;  %p37_p3 = scmp.ne.s32.totalorder %s1422_s20, %s1418_s19 }
  0x69   : > { %p38_p8 = scmp.eq.s32.totalorder %s1426_s21, 0  ;;  %p43_p13 = scmp.ne.s32.totalorder %s1418_s19, %s1414_s18 }
  0x6a   : > { %s1632_s9 = scalar_select %p28_p1, %s1422_s20, %s30_s8  }
  0x6b   : > { %p1634_p0 = por %p38_p8, %p37_p3  ;;  %p1834_p2 = scmp.eq.s32.totalorder %s1490_s24, 0 }
  0x6c   : > { %p151_p5 = scmp.eq.s32.totalorder %s1490_s24, 1  ;;  %p157_p7 = scmp.eq.s32.totalorder %s979_s28, 1 }
  0x6d   : > { %p1640_p6 = por %p1834_p2, %p43_p13  ;;  %p1147_p9 = scmp.lt.s32.totalorder %s1426_s21, 2 }
  0x6e   : > { %s229_s16 = sand.u32 1, %s1422_s20   ;;  %p1647_p4 = por %p151_p5, %p37_p3 }
  0x6f   : > { %p1651_p10 = por %p157_p7, %p43_p13  ;;  %s986_s13 = sshll.u32 %s229_s16, 3 }
  0x70   : > { %s1836_s23 = scalar_select %p1647_p4, 1, 0 }
  0x71   : > { %s1837_s12 = scalar_select %p1651_p10, 1, 0 }
  0x72   : > { %s987_s14 = sshll.u32 %s1426_s21, 7  ;;  %s233_s29 = scalar_lea.vmem [#allocation2], %s986_s13 }
  0x73   : > { %s1659_s26 = scalar_lea.hbm %s1821_s0, %s987_s14  ;;  %s240_s30 = sshll.u32 %s233_s29, 4  ;;  %s1661_s30 = int_to_ptr.vmem [resolvable:$true] %s240_s30 }
  0x74   : > { %p1665_p11 = pnand %p1147_p9, %p1634_p0  ;;  %s230_s7 = scalar_lea.sflag [#allocation3], %s229_s16 }
  0x75   : > { %s1322_s28 = scalar_lea.hbm %s1659_s26, 128  ;;  %s1327_s13 = scalar_lea.hbm %s1821_s0, 256 }
  0x76   : > { %p1323_p12 = scmp.ne.s32.totalorder %s1659_s26, %s1322_s28  ;;  %p1324_p1 = pneg %p1665_p11 }
  0x77   : > { %p1328_p13 = scmp.lt.u32.totalorder %s1659_s26, %s1821_s0  ;;  %p1329_p0 = scmp.lt.u32.totalorder %s1327_s13, %s1322_s28 }
  0x78   : > { %p1325_p3 = pnand %p1324_p1, %p1323_p12  ;;  %p1331_p5 = scmp.lt.u32.totalorder %s1322_s28, %s1659_s26 }
  0x79   : > { %p1330_p2 = por %p1329_p0, %p1328_p13 }
  0x7a   : > { %p1326_p8 = pneg %p1325_p3 }
  0x7b   : > { %p1332_p7 = por %p1331_p5, %p1330_p2 }
  0x7d   : > { %p1333_p9 = pnand %p1332_p7, %p1326_p8 }
  0x7f   : > { %1336 = shalt.err (!%p1333_p9)
}
  0x80   : > { %s1337_s16 = scalar_lea.vmem %s1661_s30, 128  ;;  %s1434_s17 = smov [#allocation2]  }
  0x81   : > { %p1338_p12 = scmp.ne.s32.totalorder %s1661_s30, %s1337_s16  ;;  %s1342_s22 = sshll.u32 %s1434_s17, 4  ;;  %s1343_s22 = int_to_ptr.vmem [resolvable:$false] %s1342_s22 }
  0x82   : > { %s1344_s29 = scalar_lea.vmem %s1343_s22, 256  ;;  %p1345_p4 = scmp.lt.s32.totalorder %s1661_s30, %s1343_s22 }
  0x83   : > { %p1340_p3 = pnand %p1338_p12, %p1324_p1  ;;  %p1346_p13 = scmp.lt.s32.totalorder %s1344_s29, %s1337_s16 }
  0x85   : > { %p1341_p10 = pneg %p1340_p3  ;;  %p1347_p0 = por %p1346_p13, %p1345_p4 }
  0x87   : > { %p1348_p2 = pnand %p1347_p0, %p1341_p10 }
  0x89   : > { %1351 = shalt.err (!%p1348_p2)
}
  0x8a   : > { %1138 = dma.hbm_to_vmem [thread:$0]  (!%p1665_p11), %s1659_s26, 128, %s1661_s30, %s230_s7  }
  0x8b   : > { %p1839_p8 = scmp.ne.s32.totalorder %s1830_s25, 0 }
  0x8c   : > { %s1697_s28 = sand.u32 (!%p1839_p8), 1, %s1418_s19  }
  0x8d   : > { %249 = sbr.rel (%p1839_p8) target bundleno = 1894 (0x766), region = 40  ;;  %s989_s27 = sshll.u32 (!%p1839_p8), %s1697_s28, 3 }
  0x8e   : > { %s252_s8 = scalar_lea.sflag (!%p1839_p8), [#allocation3], %s1697_s28  ;;  %s255_s13 = scalar_lea.vmem (!%p1839_p8), [#allocation2], %s989_s27 }
  0x94   : > { %1397 = dma.done.wait (%p1640_p6), %s252_s8, 128  }
  0x95   : > { %1399 = vsyncadd (%p1640_p6), %s252_s8, 4294967168  ;;  %p1840_p4 = scmp.eq.s32.totalorder %s1490_s24, 0 }
  0x97   : > { %1401 = dma.done.wait (%p1840_p4), [#allocation6], 512   ;;  %p1841_p10 = pmov %p1840_p4 }
  0x98   : > { %p1842_p11 = pmov %p1840_p4 }
  0x99   : > { %1403 = vsyncadd (%p1841_p10), [#allocation6], 4294966784 }
  0x9a   : > { %1405 = dma.done.wait (%p1842_p11), [#allocation9], 512   ;;  %p1843_p1 = pmov %p1840_p4 }
  0x9b   : > { %v1435_v0 = vmov 0.0   ;;  %vm1436_vm0 = vmmov 0   ;;  %v1194_v1 = vld [vmem:[#allocation5] sm:$0xff]   ;;  %v1195_v2 = vld [vmem:[#allocation5 + $0x8] sm:$0xff]   ;;  %v1721_v3 = vld [vmem:[%s255_s13] sm:$0xff]  ;;  %vm317_vm1 = vcmask 261120  }
  0x9c   : > { %1407 = vsyncadd (%p1843_p1), [#allocation9], 4294966784  ;;  %1039 = vmatprep.subr.bf16.mxu1 %v1435_v0  ;;  %1043 = vmatprep.mubr.msk.bf16.mxu1 %vm1436_vm0, %v1435_v0  ;;  %v1196_v4 = vld [vmem:[#allocation7] sm:$0xff]   ;;  %v300_v5 = vpack.c.bf16 %v1721_v3, %v1721_v3  ;;  %v1197_v6 = vld [vmem:[#allocation7 + $0x8] sm:$0xff]   ;;  %vm473_vm2 = vcmask 130048   ;;  %s1437_s25 = smov 112  }
  0x9d   : > { %1055 = vmatprep.subr.bf16.mxu0 %v1435_v0  ;;  %1059 = vmatprep.mubr.msk.bf16.mxu0 %vm1436_vm0, %v1435_v0  ;;  %v1198_v15 = vld [vmem:[#allocation8] sm:$0xff]   ;;  %v1199_v16 = vld [vmem:[#allocation8 + $0x8] sm:$0xff]   ;;  %vm550_vm3 = vcmask 64512   ;;  %vm567_vm4 = vcmask 1043456   ;;  %v1200_v37 = vld [vmem:[#allocation10] sm:$0xff]   ;;  %s1015_s15 = sshll.u32 %s1490_s24, 7 }
  0x9e   : > { %1040 = vmatpush3.bf16.msra.mxu1 %v1194_v1  ;;  %1056 = vmatpush3.bf16.msra.mxu0 %v1198_v15  ;;  %v1201_v57 = vld [vmem:[#allocation10 + $0x8] sm:$0xff]   ;;  %s297_s26 = scalar_lea.vmem [#allocation11], %s989_s27  ;;  %s1776_s10 = scalar_lea.hbm %s1826_s5, %s1015_s15 }
  0x9f   : > { %1041 = vmatprep.subr.bf16.mxu1 %v1435_v0  ;;  %1057 = vmatprep.subr.bf16.mxu0 %v1435_v0  ;;  %s871_s30 = sshll.u32 %s297_s26, 4  ;;  %s858_s24 = scalar_lea.sflag [#allocation4], %s1697_s28  ;;  %s1778_s30 = int_to_ptr.vmem [resolvable:$true] %s871_s30 }
  0xa0   : > { %s1352_s14 = scalar_lea.vmem %s1778_s30, 128  ;;  %p1844_p5 = scmp.ne.s32.totalorder %s1836_s23, 0 }
  0xa1   : > { %p1353_p6 = scmp.ne.s32.totalorder %s1778_s30, %s1352_s14  ;;  %s1438_s16 = smov [#allocation11]  }
  0xa2   : > { %1042 = vmatpush3.bf16.msra.mxu1 %v1195_v2  ;;  %1058 = vmatpush3.bf16.msra.mxu0 %v1199_v16  ;;  %s1356_s17 = sshll.u32 %s1438_s16, 4  ;;  %s1357_s17 = int_to_ptr.vmem [resolvable:$false] %s1356_s17 }
  0xa3   : > { %1047 = vmatprep.subr.bf16.mxu1 %v1435_v0  ;;  %1074 = vmatprep.subr.bf16.mxu0 %v1435_v0  ;;  %p1354_p7 = pnand %p1353_p6, %p1844_p5  ;;  %s1358_s22 = scalar_lea.vmem %s1357_s17, 256 }
  0xa4   : > { %p1359_p12 = scmp.lt.s32.totalorder %s1778_s30, %s1357_s17  ;;  %p1360_p3 = scmp.lt.s32.totalorder %s1358_s22, %s1352_s14 }
  0xa5   : > { %1044 = vmatmul.mubr.msk.bf16.vlgmr.msra.gmra.mrb[0].mxu1 %vm317_vm1, %v300_v5  ;;  %1060 = vmatmul.mubr.msk.bf16.vlgmr.msra.gmra.mrb[0].mxu0 %vm317_vm1, %v300_v5  ;;  %p1355_p9 = pneg %p1354_p7 }
  0xa6   : > { %1048 = vmatpush3.bf16.msra.mxu1 %v1196_v4  ;;  %1051 = vmatprep.mubr.msk.bf16.mxu1 %vm1436_vm0, %v1435_v0  ;;  %p1361_p13 = por %p1360_p3, %p1359_p12 }
  0xa7   : > { %1049 = vmatprep.subr.bf16.mxu1 %v1435_v0  ;;  %1076 = vmatprep.mubr.msk.bf16.mxu0 %vm1436_vm0, %v1435_v0 }
  0xa8   : > { %1075 = vmatpush3.bf16.msra.mxu0 %v1200_v37  ;;  %p1362_p0 = pnand %p1361_p13, %p1355_p9 }
  0xa9   : > { %1085 = vmatprep.subr.bf16.mxu0 %v1435_v0 }
  0xaa   : > { %1050 = vmatpush3.bf16.msra.mxu1 %v1197_v6 }
  0xab   : > { %1063 = vmatprep.subr.mxu1 %v1435_v0 }
  0xad   : > { %1052 = vmatmul.mubr.msk.bf16.vlgmr.msra.gmra.mrb[4].mxu1 %vm317_vm1, %v300_v5 }
  0xae   : > { %1065 = vmatprep.mubr.msk.f32.mxu1 %vm1436_vm0, %v1435_v0 }
 0x178   : > { %v355_v7 = vpop.f32.mrb[0].mxu1  ;;  %v467_v25 = vpop.f32.mrb[0].mxu0 }
 0x179   : > { %v1045_v8 = vpop.f32.mrb[1].mxu1  ;;  %v563_v26 = vpack.c.bf16 %v467_v25, %v467_v25  ;;  %v1061_v27 = vpop.f32.mrb[1].mxu0 }
 0x17a   : > { %v358_v9 = vpop.f32.mrb[2].mxu1  ;;  %v470_v28 = vpop.f32.mrb[2].mxu0 }
 0x17b   : > { %v1046_v10 = vpop.f32.mrb[3].mxu1  ;;  %v569_v29 = vsel %vm567_vm4, %v563_v26, 0  ;;  %v1062_v30 = vpop.f32.mrb[3].mxu0 }
 0x180   : > { %v411_v11 = vpop.f32.mrb[4].mxu1 }
 0x181   : > { %666 = vrot.lane.b32.xlu1 %v411_v11, %s1437_s25  ;;  %v1053_v12 = vpop.f32.mrb[5].mxu1  ;;  %1064 = vmatpush3.xpose.msk.msra.mxu1 %vm473_vm2, %v411_v11 }
 0x182   : > { %v414_v13 = vpop.f32.mrb[6].mxu1  ;;  %1068 = vmatprep.subr.bf16.mxu1 %v1435_v0 }
 0x183   : > { %v1054_v14 = vpop.f32.mrb[7].mxu1 }
 0x184   : > { %1066 = vmatmul.mubr.msk.f32.vlgmr.msra.gmra.mrb[8].mxu1 %vm473_vm2, %v355_v7 }
 0x185   : > { %664 = vrot.lane.b32.xlu1 %v355_v7, %s1437_s25  ;;  %1070 = vmatprep.mubr.msk.bf16.mxu1 %vm1436_vm0, %v1435_v0 }
 0x186   : > { %1069 = vmatpush3.bf16.msra.mxu1 %v569_v29 }
 0x187   : > { %1080 = vmatprep.subr.mxu1 %v1435_v0 }
 0x1f3   : > { %v667_v35 = vpop.permute.xlu1 %666 }
 0x1f7   : > { %v665_v36 = vpop.permute.xlu1 %664 }
 0x257   : > { %v546_v17 = vpop.f32.mrb[8].mxu1 }
 0x258   : > { %v1067_v18 = vpop.f32.mrb[9].mxu1  ;;  %v551_v19 = vsel %vm550_vm3, %v546_v17, -inf }
 0x259   : > { %552 = vmax.xlane.f32.xlu0 %v551_v19 }
 0x2e6   : > { %v553_v20 = vpop.xlane.xlu0 %552 }
 0x2e7   : > { %v554_v21 = vsub.f32 %v546_v17, %v553_v20 }
 0x2e9   : > { %v555_v22 = vmul.f32 1.442695, %v554_v21 }
 0x2eb   : > { %1202 = vpow2.f32 %v555_v22 }
 0x2f5   : > { %v1203_v23 = vpop.eup %1202 }
 0x2f6   : > { %v557_v24 = vsel %vm550_vm3, %v1203_v23, 0.0 }
 0x2f7   : > { %558 = vadd.xlane.f32.xlu0 %v557_v24 }
 0x384   : > { %v559_v31 = vpop.xlane.xlu0 %558 }
 0x385   : > { %1204 = vrcp.f32 %v559_v31 }
 0x38f   : > { %v1205_v32 = vpop.eup %1204 }
 0x390   : > { %v561_v33 = vmul.f32 %v1205_v32, %v1203_v23 }
 0x392   : > { %v562_v34 = vpack.c.bf16 %v561_v33, %v561_v33 }
 0x394   : > { %1071 = vmatmul.mubr.msk.bf16.vlgmr.msra.gmra.mrb[12].mxu1 %vm550_vm3, %v562_v34 }
 0x395   : > { %1081 = vmatpush3.xpose.msk.msra.mxu1 %vm473_vm2, %v667_v35  ;;  %1082 = vmatprep.mubr.msk.f32.mxu1 %vm1436_vm0, %v1435_v0 }
 0x39c   : > { %1083 = vmatmul.mubr.msk.f32.vlgmr.msra.gmra.mrb[10].mxu1 %vm473_vm2, %v665_v36 }
 0x467   : > { %v605_v38 = vpop.f32.mrb[12].mxu1 }
 0x468   : > { %v611_v39 = vpack.c.bf16 %v605_v38, %v605_v38  ;;  %v1072_v40 = vpop.f32.mrb[13].mxu1 }
 0x469   : > { %v608_v41 = vpop.f32.mrb[14].mxu1 }
 0x46a   : > { %v1073_v42 = vpop.f32.mrb[15].mxu1  ;;  %1077 = vmatmul.mubr.msk.bf16.vlgmr.msra.gmra.mrb[4].mxu0 %vm473_vm2, %v611_v39 }
 0x46b   : > { %1087 = vmatprep.mubr.msk.bf16.mxu0 %vm1436_vm0, %v1435_v0 }
 0x46f   : > { %v738_v43 = vpop.f32.mrb[10].mxu1 }
 0x470   : > { %v1084_v44 = vpop.f32.mrb[11].mxu1  ;;  %v742_v45 = vsel %vm550_vm3, %v738_v43, -inf }
 0x471   : > { %743 = vmax.xlane.f32.xlu0 %v742_v45 }
 0x487   : > { %755 = vrot.lane.b32.xlu0 %v563_v26, %s1437_s25 }
 0x4fe   : > { %v744_v46 = vpop.xlane.xlu0 %743 }
 0x4ff   : > { %v745_v47 = vsub.f32 %v738_v43, %v744_v46 }
 0x501   : > { %v746_v48 = vmul.f32 1.442695, %v745_v47 }
 0x502   : > { %v756_v49 = vpop.permute.xlu0 %755 }
 0x503   : > { %1206 = vpow2.f32 %v746_v48  ;;  %v761_v50 = vsel %vm567_vm4, %v756_v49, 0 }
 0x504   : > { %1086 = vmatpush3.bf16.msra.mxu0 %v761_v50 }
 0x505   : > { %1091 = vmatprep.subr.bf16.mxu0 %v1435_v0 }
 0x50d   : > { %v1207_v51 = vpop.eup %1206 }
 0x50e   : > { %v748_v52 = vsel %vm550_vm3, %v1207_v51, 0.0 }
 0x50f   : > { %749 = vadd.xlane.f32.xlu1 %v748_v52 }
 0x59c   : > { %v750_v53 = vpop.xlane.xlu1 %749 }
 0x59d   : > { %1208 = vrcp.f32 %v750_v53 }
 0x5a7   : > { %v1209_v54 = vpop.eup %1208 }
 0x5a8   : > { %v752_v55 = vmul.f32 %v1209_v54, %v1207_v51 }
 0x5aa   : > { %v753_v56 = vpack.c.bf16 %v752_v55, %v752_v55 }
 0x5ac   : > { %1088 = vmatmul.mubr.msk.bf16.vlgmr.msra.gmra.mrb[8].mxu0 %vm550_vm3, %v753_v56 }
 0x5ad   : > { %1093 = vmatprep.mubr.msk.bf16.mxu0 %vm1436_vm0, %v1435_v0  ;;  %1092 = vmatpush3.bf16.msra.mxu0 %v1201_v57 }
 0x67f   : > { %v797_v58 = vpop.f32.mrb[8].mxu0 }
 0x680   : > { %v803_v59 = vpack.c.bf16 %v797_v58, %v797_v58  ;;  %v1089_v60 = vpop.f32.mrb[9].mxu0 }
 0x681   : > { %v800_v61 = vpop.f32.mrb[10].mxu0 }
 0x682   : > { %v1090_v62 = vpop.f32.mrb[11].mxu0  ;;  %1094 = vmatmul.mubr.msk.bf16.vlgmr.msra.gmra.mrb[4].mxu0 %vm473_vm2, %v803_v59 }
 0x755   : > { %v849_v63 = vpop.f32.mrb[4].mxu0 }
 0x756   : > { %v1097_v1 = vadd.f32 %v849_v63, %v1721_v3  ;;  %v1095_v2 = vpop.f32.mrb[5].mxu0 }
 0x757   : > { %v852_v0 = vpop.f32.mrb[6].mxu0 }
 0x758   : > { %v1096_v4 = vpop.f32.mrb[7].mxu0  ;;  %856 = vst.msk [vmem:[%s297_s26] sm:$0xff] %vm317_vm1, %v1097_v1 }
 0x759   : > { %1365 = shalt.err (!%p1362_p0)
}
 0x75a   : > { %s1366_s29 = scalar_lea.hbm %s1776_s10, 128  ;;  %s1370_s8 = scalar_lea.hbm %s1826_s5, 256 }
 0x75b   : > { %p1367_p2 = scmp.ne.s32.totalorder %s1776_s10, %s1366_s29  ;;  %p1371_p10 = scmp.lt.u32.totalorder %s1776_s10, %s1826_s5 }
 0x75c   : > { %p1372_p11 = scmp.lt.u32.totalorder %s1370_s8, %s1366_s29  ;;  %p1374_p6 = scmp.lt.u32.totalorder %s1366_s29, %s1776_s10 }
 0x75d   : > { %p1368_p8 = pnand %p1367_p2, %p1844_p5 }
 0x75e   : > { %p1373_p1 = por %p1372_p11, %p1371_p10 }
 0x75f   : > { %p1369_p4 = pneg %p1368_p8 }
 0x760   : > { %p1375_p7 = por %p1374_p6, %p1373_p1 }
 0x762   : > { %p1376_p9 = pnand %p1375_p7, %p1369_p4 }
 0x764   : > { %1379 = shalt.err (!%p1376_p9)
}
 0x765   : > { %1120 = dma.vmem_to_hbm [thread:$0]  (%p1844_p5), %s1778_s30, 128, %s1776_s10, %s858_s24  }
 0x766 PF: > { %s883_s15 = sand.u32 1, %s1414_s18   ;;  %p1845_p12 = scmp.ne.s32.totalorder %s1837_s12, 0 }
 0x767   : > { %p1846_p3 = scmp.ge.s32.totalorder %s1426_s21, 2  ;;  %s884_s26 = scalar_lea.sflag [#allocation4], %s883_s15 }
 0x769   : > { %p1140_p13 = pnand %p1846_p3, %p1845_p12 }
 0x76b   : > { %1409 = dma.done.wait (!%p1140_p13), %s884_s26, 128  }
 0x76c   : > { %1411 = vsyncadd (!%p1140_p13), %s884_s26, 4294967168  ;;  %p20_p0 = scmp.ge.s32.totalorder %s1621_s11, 4   ;;  %s1847_s18 = smov %s1418_s19 }
 0x76d   : > { %s1848_s19 = smov %s1422_s20  ;;  %s1849_s20 = smov %s1632_s9 }
 0x76e   : > { %s1850_s21 = smov %s1621_s11  ;;  %22 = sbr.rel (!%p20_p0) target bundleno = 7 (0x7), region = 101 }
 0x775   :  { %889 = vsyncpa [#allocation3], 1 }
 0x776   :  { %891 = vsyncpa [#allocation3 + $0x1], 1 }
 0x777   :  { %892 = vsyncpa [#allocation6], 1 }
 0x778   :  { %893 = vsyncpa [#allocation9], 1 }
 0x779   :  { %894 = vsyncpa [#allocation4], 1 }
 0x77a   :  { %896 = vsyncpa [#allocation4 + $0x1], 1 }

</bundles_post_ra>
